<compile_context>
chip_gen: v7x
topology: tpu7x:2x2x1
jax: 0.10.0
libtpu: 0.0.40
codegen_flags: <defaults>
</compile_context>

<pallas_src>
import jax
import jax.numpy as jnp
from jax.experimental import pallas as pl
from jax.experimental.pallas import tpu as pltpu


def _concat_pool_kernel(x_ref, out_ref):
    # x_ref: (tile_r, HW) input block; out_ref: (1, 2, tile_r) lane-dense block.
    x = x_ref[...]
    hw = x.shape[-1]
    mx = jnp.max(x, axis=-1)                             # (tile_r,), exact in dtype
    s = jnp.sum(x.astype(jnp.float32), axis=-1)          # f32 accumulation
    avg = s * (1.0 / hw)
    out_ref[0, 0, :] = mx.astype(out_ref.dtype)
    out_ref[0, 1, :] = avg.astype(out_ref.dtype)


def _round_up(v, m):
    return ((v + m - 1) // m) * m


def _choose_tile_r(R, HW, itemsize):
    """Largest row tile that fits the VMEM budget, sublane/lane aligned."""
    # Sublane packing: 8 rows for 32-bit dtypes, 16 for bf16, 32 for 8-bit.
    align = max(8, 32 // itemsize)
    # Budget for the double-buffered input window (+ f32 upcast for narrow dtypes).
    budget = 24 * 1024 * 1024
    per_row = HW * (2 * itemsize + (4 if itemsize < 4 else 0))
    cap = max(1, budget // per_row)
    cap = min(cap, 2048)                       # diminishing returns past ~2K rows
    if R > 256:
        # Keep at least 2 grid steps so megacore parts (v7x) can split the axis.
        cap = min(cap, _round_up(-(-R // 2), 128))
    if R <= cap:
        if R < align or R % align == 0:
            return R                           # one full-dim block
        return max(align, (R // align) * align)  # aligned tile, partial last block
    if cap >= 128:
        return (cap // 128) * 128              # lane-dense output rows
    return min(max(align, (cap // align) * align), R)


@jax.jit
def adaptive_concat_pool2d(x):
    """x: (N, C, H, W) -> (N, 2C, 1, 1); [max-pool, avg-pool] concatenated on C."""
    N, C, H, W = x.shape
    R = N * C
    HW = H * W
    x2d = x.reshape(R, HW)

    tile_r = _choose_tile_r(R, HW, x.dtype.itemsize)
    num_tiles = pl.cdiv(R, tile_r)

    out = pl.pallas_call(
        _concat_pool_kernel,
        out_shape=jax.ShapeDtypeStruct((num_tiles, 2, tile_r), x.dtype),
        grid=(num_tiles,),
        in_specs=[pl.BlockSpec((tile_r, HW), lambda i: (i, 0))],
        out_specs=pl.BlockSpec((1, 2, tile_r), lambda i: (i, 0, 0)),
        compiler_params=pltpu.CompilerParams(
            dimension_semantics=("parallel",),
            vmem_limit_bytes=48 * 1024 * 1024,
        ),
    )(x2d)

    # (num_tiles, 2, tile_r) -> (2, R) (drop padded rows) -> (N, 2C, 1, 1).
    out = jnp.transpose(out, (1, 0, 2)).reshape(2, num_tiles * tile_r)[:, :R]
    out = out.reshape(2, N, C)
    return jnp.transpose(out, (1, 0, 2)).reshape(N, 2 * C, 1, 1)


def _reference(x):
    ref_max = jnp.max(x, axis=(2, 3), keepdims=True)
    ref_avg = jnp.mean(x, axis=(2, 3), keepdims=True)
    return jnp.concatenate([ref_max, ref_avg], axis=1)


if __name__ == "__main__":
    k1, k2 = jax.random.split(jax.random.PRNGKey(0))

    # Primary small test (module-consistent shape).
    N, C, H, W = 2, 4, 16, 16
    x = jax.random.normal(k1, (N, C, H, W), dtype=jnp.float32)
    out = adaptive_concat_pool2d(x)
    jax.block_until_ready(out)
    assert out.shape == (N, 2 * C, 1, 1), out.shape
    assert jnp.allclose(out, _reference(x), atol=1e-5, rtol=1e-5), "mismatch (primary)"

    # Secondary test: R not a multiple of the sublane alignment and odd H*W,
    # exercising the partial-last-block / output-row-padding path.
    N2, C2, H2, W2 = 3, 5, 7, 7
    x2 = jax.random.normal(k2, (N2, C2, H2, W2), dtype=jnp.float32)
    out2 = adaptive_concat_pool2d(x2)
    jax.block_until_ready(out2)
    assert out2.shape == (N2, 2 * C2, 1, 1), out2.shape
    assert jnp.allclose(out2, _reference(x2), atol=1e-5, rtol=1e-5), "mismatch (padded)"

    print("KERNEL_OK")
</pallas_src>

<mosaic_0001>
module attributes {stable_mosaic.version = 11 : i64} {
  func.func @_concat_pool_kernel(%arg0: i32, %arg1: memref<8x256xf32, #tpu.memory_space<vmem>>, %arg2: memref<1x2x8xf32, #tpu.memory_space<vmem>>) attributes {dimension_semantics = [#tpu.dimension_semantics<parallel>], iteration_bounds = array<i64: 1>, scalar_prefetch = 0 : i64, scratch_operands = 0 : i64, tpu.core_type = #tpu.core_type<tc>, window_params = [{transform_indices = @transform_0, window_bounds = array<i64: 8, 256>}, {transform_indices = @transform_1, window_bounds = array<i64: 1, 2, 8>}]} {
    %c0 = arith.constant 0 : index
    %c0_0 = arith.constant 0 : index
    %0 = vector.load %arg1[%c0, %c0_0] : memref<8x256xf32, #tpu.memory_space<vmem>>, vector<8x256xf32>
    %cst = arith.constant dense<0xFF800000> : vector<8xf32>
    %1 = vector.multi_reduction <maximumf>, %0, %cst [1] : vector<8x256xf32> to vector<8xf32>
    %cst_1 = arith.constant dense<0.000000e+00> : vector<8xf32>
    %2 = vector.multi_reduction <add>, %0, %cst_1 [1] : vector<8x256xf32> to vector<8xf32>
    %cst_2 = arith.constant 3.906250e-03 : f32
    %3 = vector.broadcast %cst_2 : f32 to vector<8xf32>
    %4 = arith.mulf %2, %3 : vector<8xf32>
    %c0_3 = arith.constant 0 : index
    %c0_4 = arith.constant 0 : index
    %c0_5 = arith.constant 0 : index
    %5 = vector.load %arg2[%c0_3, %c0_4, %c0_5] : memref<1x2x8xf32, #tpu.memory_space<vmem>>, vector<1x1x8xf32>
    %6 = vector.shape_cast %5 : vector<1x1x8xf32> to vector<8xf32>
    %7 = vector.shape_cast %1 : vector<8xf32> to vector<1x1x8xf32>
    tpu.vector_store %arg2[%c0_3, %c0_4, %c0_5], %7 {strides = array<i32>} : memref<1x2x8xf32, #tpu.memory_space<vmem>>, vector<1x1x8xf32>,
    %c0_6 = arith.constant 0 : index
    %c1 = arith.constant 1 : index
    %c0_7 = arith.constant 0 : index
    %8 = vector.load %arg2[%c0_6, %c1, %c0_7] : memref<1x2x8xf32, #tpu.memory_space<vmem>>, vector<1x1x8xf32>
    %9 = vector.shape_cast %8 : vector<1x1x8xf32> to vector<8xf32>
    %10 = vector.shape_cast %4 : vector<8xf32> to vector<1x1x8xf32>
    tpu.vector_store %arg2[%c0_6, %c1, %c0_7], %10 {strides = array<i32>} : memref<1x2x8xf32, #tpu.memory_space<vmem>>, vector<1x1x8xf32>,
    return
  }
  func.func @transform_0(%arg0: i32) -> (i32, i32) {
    %c0_i32 = arith.constant 0 : i32
    %c0_i32_0 = arith.constant 0 : i32
    return %arg0, %c0_i32 : i32, i32
  }
  func.func @transform_1(%arg0: i32) -> (i32, i32, i32) {
    %c0_i32 = arith.constant 0 : i32
    %c0_i32_0 = arith.constant 0 : i32
    %c0_i32_1 = arith.constant 0 : i32
    return %arg0, %c0_i32, %c0_i32_0 : i32, i32, i32
  }
}

</mosaic_0001>

<bundles_post_ra>
// kernel: adaptive_concat_pool2d.1
= control target key start
LH: loop header
LB: loop body
LE: loop exit
PB: predicated region body
PF: predicated region fallthrough
CT: control target
= control target key end

     0   :  { %v18_v4 = vlaneseq  ;;  %vm25_vm0 = vcmask 57344   ;;  %s60_s0 = inlined_call_operand.vmem [shape: f32[8,256], index: 0, kind: input, shape index: {}]   ;;  %s61_s1 = inlined_call_operand.vmem [shape: f32[1,2,8], index: 1, kind: output, shape index: {}]  }
   0x1   :  { %v8_v0 = vld [vmem:[%s60_s0] sm:$0xff]  ;;  %v9_v1 = vld [vmem:[%s60_s0 + $0x8] sm:$0xff] }
   0x2   :  { %v13_v2 = vadd.f32 %v9_v1, %v8_v0  ;;  %v10_v3 = vmax.f32 %v8_v0, %v9_v1  ;;  %v19_v5 = vand.u32 127, %v18_v4  ;;  %v21_v6 = vshrl.u32 %v18_v4, 7 }
   0x4   :  { %14 = vadd.xlane.f32.xlu0 %v13_v2  ;;  %v22_v7 = vsub.s32 %v19_v5, %v21_v6 }
   0x8   :  { %11 = vmax.xlane.f32.xlu0 %v10_v3 }
  0x91   :  { %v15_v8 = vpop.xlane.xlu0 %14 }
  0x92   :  { %v16_v9 = vmul.f32 0.00390625, %v15_v8 }
  0x94   :  { %v31_v10 = vrot.slane %v16_v9, %v22_v7 }
  0x95   :  { %v12_v11 = vpop.xlane.xlu0 %11 }
  0x96   :  { %33 = vst.msk [vmem:[%s61_s1 + $0x1] sm:$0x1] %vm25_vm0, %v31_v10  ;;  %v23_v12 = vrot.slane %v12_v11, %v22_v7 }
  0x98   :  { %26 = vst.msk [vmem:[%s61_s1] sm:$0x1] %vm25_vm0, %v23_v12 }

</bundles_post_ra>
